<compile_context>
chip_gen: v5e
topology: v5e:2x2
jax: 0.10.0
libtpu: 0.0.40
codegen_flags: <defaults>
</compile_context>

<pallas_src>
import jax
import jax.numpy as jnp
import numpy as np
from jax.experimental import pallas as pl
from jax.experimental.pallas import tpu as pltpu

LANE = 128      # TPU lane width; output channels padded up to a multiple of this
SUBLANE = 8
_VMEM_BUDGET = 26 * 1024 * 1024   # target working set (fits scoped VMEM with margin)
_VMEM_LIMIT = 32 * 1024 * 1024    # explicit scoped-VMEM limit (raises v5e's 16 MiB default)


# ----------------------------------------------------------------------------
# Kernels
# ----------------------------------------------------------------------------
def _affine_kernel_single(x_ref, m_ref, b_ref, o_ref):
    # Single contraction tile: M's block index never changes, so Pallas keeps it
    # resident in VMEM across batch tiles. x is cast in-kernel (hides under MXU).
    x = x_ref[...].astype(m_ref.dtype)
    y = jnp.dot(x, m_ref[...], preferred_element_type=jnp.float32) + b_ref[...]
    o_ref[...] = y.astype(o_ref.dtype)


def _affine_kernel_ktiled(x_ref, m_ref, b_ref, o_ref, acc_ref):
    # Large-image fallback: contraction tiled as trailing "arbitrary" axis with
    # an f32 VMEM accumulator.
    k = pl.program_id(1)

    @pl.when(k == 0)
    def _():
        acc_ref[...] = jnp.zeros_like(acc_ref)

    x = x_ref[...].astype(m_ref.dtype)
    acc_ref[...] += jnp.dot(x, m_ref[...], preferred_element_type=jnp.float32)

    @pl.when(k == pl.num_programs(1) - 1)
    def _():
        o_ref[...] = (acc_ref[...] + b_ref[...]).astype(o_ref.dtype)


def _batch_softmax_kernel(y_ref, o_ref):
    # nn.Softmax(dim=0): softmax across the batch axis of the (B, o_pad) result.
    # exp / reciprocal ride the EUP slot; tiny amount of work on (B, 128).
    y = y_ref[...]
    mx = jnp.max(y, axis=0, keepdims=True)
    e = jnp.exp(y - mx)
    o_ref[...] = e * pl.reciprocal(jnp.sum(e, axis=0, keepdims=True), approx=True)


# ----------------------------------------------------------------------------
# Tiling policy
# ----------------------------------------------------------------------------
def _round_up(x, m):
    return (x + m - 1) // m * m


def _choose_tiles(B, NN, o_pad, m_bytes):
    """Pick (batch tile, contraction tile, single_k) under a VMEM budget."""
    if NN <= 4096:
        tk = NN                                   # M resident, no k axis
    else:
        tk = 0
        for cand in range(2048, LANE - 1, -LANE):  # largest lane-aligned divisor
            if NN % cand == 0:
                tk = cand
                break
        if tk == 0:
            # TODO(synk): NN has no multiple-of-128 divisor <= 2048; full-contraction
            # fallback (tb is shrunk below to bound VMEM).  Could pad NN offline.
            tk = NN
    single_k = (tk == NN)

    # Per-block VMEM bytes: x (f32, double-buffered) + M (double-buffered; resident
    # anyway when single_k since its block index never changes) + out + acc + bias.
    fixed = 2 * tk * o_pad * m_bytes + 2 * o_pad * 4
    per_row = 2 * tk * 4 + 2 * o_pad * 4 + (0 if single_k else o_pad * 4)
    if fixed >= _VMEM_BUDGET:
        tb_cap = SUBLANE
    else:
        tb_cap = max(SUBLANE, int((_VMEM_BUDGET - fixed) // per_row))

    if B <= SUBLANE:
        tb = B
    else:
        tb = min(256, tb_cap, _round_up(B, SUBLANE))
        tb = max(SUBLANE, (tb // SUBLANE) * SUBLANE)
        if B <= tb and B >= 2 * SUBLANE:
            # keep >= 2 batch programs so v7x's two TensorCores both get work
            tb = _round_up((B + 1) // 2, SUBLANE)
    return tb, tk, single_k


# ----------------------------------------------------------------------------
# Forward:  y = x_flat @ M + b   (+ optional softmax over the batch axis)
# ----------------------------------------------------------------------------
def wavmlp_forward(x_nchw, M, bias, out_channels, *, tail=False):
    """x_nchw: (B, 1, N, N) float32.
    M: (N*N, o_pad) folded weight (bf16 or f32; cast ONCE offline).
    bias: (1, o_pad) float32 folded bias.
    Returns (B, out_channels) float32."""
    B = x_nchw.shape[0]
    NN, o_pad = M.shape
    x_flat = x_nchw.reshape(B, NN)          # no dtype cast here: done in-kernel

    tb, tk, single_k = _choose_tiles(B, NN, o_pad, M.dtype.itemsize)
    nb = pl.cdiv(B, tb)

    if single_k:
        cp = pltpu.CompilerParams(dimension_semantics=("parallel",),
                                  vmem_limit_bytes=_VMEM_LIMIT)
        y_pad = pl.pallas_call(
            _affine_kernel_single,
            out_shape=jax.ShapeDtypeStruct((B, o_pad), jnp.float32),
            grid=(nb,),
            in_specs=[
                pl.BlockSpec((tb, NN), lambda i: (i, 0)),      # x tile (f32)
                pl.BlockSpec((NN, o_pad), lambda i: (0, 0)),   # M: constant idx -> resident
                pl.BlockSpec((1, o_pad), lambda i: (0, 0)),    # folded bias (f32)
            ],
            out_specs=pl.BlockSpec((tb, o_pad), lambda i: (i, 0)),
            compiler_params=cp,
        )(x_flat, M, bias)
    else:
        cp = pltpu.CompilerParams(dimension_semantics=("parallel", "arbitrary"),
                                  vmem_limit_bytes=_VMEM_LIMIT)
        y_pad = pl.pallas_call(
            _affine_kernel_ktiled,
            out_shape=jax.ShapeDtypeStruct((B, o_pad), jnp.float32),
            grid=(nb, NN // tk),
            in_specs=[
                pl.BlockSpec((tb, tk), lambda i, k: (i, k)),
                pl.BlockSpec((tk, o_pad), lambda i, k: (k, 0)),
                pl.BlockSpec((1, o_pad), lambda i, k: (0, 0)),
            ],
            out_specs=pl.BlockSpec((tb, o_pad), lambda i, k: (i, 0)),
            scratch_shapes=[pltpu.VMEM((tb, o_pad), jnp.float32)],
            compiler_params=cp,
        )(x_flat, M, bias)

    if tail:
        # Batch-axis softmax as a separate tiny kernel over the (B, o_pad) result:
        # keeps the matmul batch-tiled (dual-TC on v7x, bounded VMEM) for any B.
        # Padded output columns are all-zero -> softmax gives 1/B there; sliced off.
        y_pad = pl.pallas_call(
            _batch_softmax_kernel,
            out_shape=jax.ShapeDtypeStruct((B, o_pad), jnp.float32),
            grid=(1,),
            in_specs=[pl.BlockSpec((B, o_pad), lambda i: (0, 0))],
            out_specs=pl.BlockSpec((B, o_pad), lambda i: (0, 0)),
            compiler_params=pltpu.CompilerParams(vmem_limit_bytes=_VMEM_LIMIT),
        )(y_pad)

    return y_pad[:, :out_channels]   # drop lane padding (glue slice outside)


# ----------------------------------------------------------------------------
# Parameter setup + offline affine fold (plain host/NumPy glue, no Kron)
# ----------------------------------------------------------------------------
def haar_analysis_matrices(n, level):
    """Level-`level` orthonormal Haar analysis: low-pass P and detail D, (n/2^level, n)."""
    def lo_hi(size):
        m = size // 2
        lo = np.zeros((m, size), np.float32)
        hi = np.zeros((m, size), np.float32)
        s = np.float32(1.0 / np.sqrt(2.0))
        for r in range(m):
            lo[r, 2 * r] = s
            lo[r, 2 * r + 1] = s
            hi[r, 2 * r] = s
            hi[r, 2 * r + 1] = -s
        return lo, hi

    P = np.eye(n, dtype=np.float32)
    size = n
    for _ in range(level - 1):
        lo, _ = lo_hi(size)
        P = lo @ P
        size //= 2
    lo, hi = lo_hi(size)
    D = hi @ P
    P = lo @ P
    return jnp.asarray(P), jnp.asarray(D)


def fold_params(raw, n, m, hidden, out_channels):
    """Fold Haar bands + MicroWav Linears + output Linear into (M, bias).

    y = x_flat @ M + b  with
      M[r*N+c, o] = sum_i sum_{p,q} L_i[p,r] R_i[q,c] Weff_i[p,q,o],
      Weff_i = W1_i @ W2_i,   (L,R) in {(P,D),(D,P),(D,D)}  for (cH,cV,cD).
    Computed separably from the small (m, N) analysis matrices in float64 on
    host; the big kron operator is never materialized.  Output lanes padded to
    a multiple of 128 (lane-dense, unmasked stores)."""
    P, D, (wH, bH), (wV, bV), (wD, bD), (wO, bO) = raw
    H, O = hidden, out_channels
    o_pad = ((O + LANE - 1) // LANE) * LANE

    Pn = np.array(P, np.float64)
    Dn = np.array(D, np.float64)
    wOn = np.array(wO, np.float64)
    w2_blocks = [wOn[:, i * H:(i + 1) * H].T for i in range(3)]   # each (H, O)
    bands = (((Pn, Dn), wH, bH), ((Dn, Pn), wV, bV), ((Dn, Dn), wD, bD))

    M = np.zeros((n * n, O), np.float64)
    b = np.array(bO, np.float64)
    for ((L, R), w1, b1), w2 in zip(bands, w2_blocks):
        weff = (np.array(w1, np.float64).T @ w2).reshape(m, m, O)   # (m*m,H)@(H,O)
        M = M + np.einsum('pr,qc,pqo->rco', L, R, weff).reshape(n * n, O)
        b = b + np.array(b1, np.float64) @ w2

    M_pad = np.zeros((n * n, o_pad), np.float32)
    M_pad[:, :O] = M
    b_pad = np.zeros((1, o_pad), np.float32)
    b_pad[0, :O] = b
    return jnp.asarray(M_pad), jnp.asarray(b_pad), O


def init_params(key, in_channels, hidden_size, out_channels, level):
    assert level != 0, "Level 0 wavelet not supported"
    n = in_channels
    m = n >> level
    assert m * (1 << level) == n, "image side must be divisible by 2**level"
    P, D = haar_analysis_matrices(n, level)

    ks = jax.random.split(key, 4)

    def linear(k, fan_in, fan_out):                       # torch Linear layout (out, in)
        bound = 1.0 / np.sqrt(fan_in)
        kw, kb = jax.random.split(k)
        w = jax.random.uniform(kw, (fan_out, fan_in), jnp.float32, -bound, bound)
        b = jax.random.uniform(kb, (fan_out,), jnp.float32, -bound, bound)
        return w, b

    wH, bH = linear(ks[0], m * m, hidden_size)
    wV, bV = linear(ks[1], m * m, hidden_size)
    wD, bD = linear(ks[2], m * m, hidden_size)
    wO, bO = linear(ks[3], 3 * hidden_size, out_channels)

    raw = (P, D, (wH, bH), (wV, bV), (wD, bD), (wO, bO))
    folded = fold_params(raw, n, m, hidden_size, out_channels)
    return folded, raw


# ----------------------------------------------------------------------------
# Pure-JAX reference (mirrors the PyTorch module structure, layer by layer)
# ----------------------------------------------------------------------------
def wavmlp_reference(x_nchw, raw, tail=False):
    P, D, (wH, bH), (wV, bV), (wD, bD), (wO, bO) = raw
    hp = jax.lax.Precision.HIGHEST
    X = x_nchw[:, 0].astype(jnp.float32)                  # (B, N, N)
    cH = jnp.einsum('pi,bij,qj->bpq', P, X, D, precision=hp)
    cV = jnp.einsum('pi,bij,qj->bpq', D, X, P, precision=hp)
    cD = jnp.einsum('pi,bij,qj->bpq', D, X, D, precision=hp)

    def lin(c, w, b):
        return jnp.dot(c.reshape(c.shape[0], -1), w.T, precision=hp) + b

    h = lin(cH, wH, bH)
    v = lin(cV, wV, bV)
    d = lin(cD, wD, bD)
    z = jnp.stack([h, v, d], axis=1).reshape(X.shape[0], -1)   # Flatten(start_dim=1)
    y = jnp.dot(z, wO.T, precision=hp) + bO
    if tail:
        y = jax.nn.softmax(y, axis=0)                     # nn.Softmax(dim=0)
    return y


if __name__ == "__main__":
    # NOTE: toy shapes — at B=2, N=16 the kernel is launch/DMA-overhead bound;
    # the structural wins (resident M, single lane-dense matmul, in-kernel bf16
    # cast, split softmax) show up at realistic B / N.
    B, N, HIDDEN, OUT, LEVEL = 2, 16, 32, 8, 2

    key = jax.random.PRNGKey(0)
    kx, kp = jax.random.split(key)
    x = jax.random.normal(kx, (B, 1, N, N), jnp.float32)   # NCHW, single-channel
    (M32, bias, OUTC), raw = init_params(kp, in_channels=N, hidden_size=HIDDEN,
                                         out_channels=OUT, level=LEVEL)
    # Cast the folded weight to bf16 ONCE (MXU-native); bias stays f32
    # (added after the f32 accumulation inside the kernel).
    Mbf = M32.astype(jnp.bfloat16)

    y_ref = wavmlp_reference(x, raw, tail=False)

    # f32 path: validates the affine fold itself against the layer-by-layer ref.
    y32 = jax.block_until_ready(wavmlp_forward(x, M32, bias, OUTC, tail=False))
    assert y32.shape == (B, OUT)
    np.testing.assert_allclose(np.asarray(y32), np.asarray(y_ref),
                               rtol=2e-3, atol=2e-3)

    # bf16 weights (MXU-native), x cast in-kernel, f32 accumulation.
    ybf = jax.block_until_ready(wavmlp_forward(x, Mbf, bias, OUTC, tail=False))
    np.testing.assert_allclose(np.asarray(ybf), np.asarray(y_ref),
                               rtol=1e-2, atol=1e-2)

    # tail=True: Softmax over the batch axis (dim=0), as a separate tiny kernel.
    yt = jax.block_until_ready(wavmlp_forward(x, Mbf, bias, OUTC, tail=True))
    yt_ref = wavmlp_reference(x, raw, tail=True)
    np.testing.assert_allclose(np.asarray(yt), np.asarray(yt_ref),
                               rtol=1e-2, atol=1e-2)

    print("KERNEL_OK")
</pallas_src>

<mosaic_0001>
module attributes {stable_mosaic.version = 11 : i64} {
  func.func @_affine_kernel_single(%arg0: i32, %arg1: memref<2x256xf32, #tpu.memory_space<vmem>>, %arg2: memref<256x128xf32, #tpu.memory_space<vmem>>, %arg3: memref<1x128xf32, #tpu.memory_space<vmem>>, %arg4: memref<2x128xf32, #tpu.memory_space<vmem>>) attributes {dimension_semantics = [#tpu.dimension_semantics<parallel>], iteration_bounds = array<i64: 1>, scalar_prefetch = 0 : i64, scratch_operands = 0 : i64, tpu.core_type = #tpu.core_type<tc>, window_params = [{transform_indices = @transform_0, window_bounds = array<i64: 2, 256>}, {pipeline_mode = #tpu.pipeline_mode<synchronous>, transform_indices = @transform_1, window_bounds = array<i64: 256, 128>}, {pipeline_mode = #tpu.pipeline_mode<synchronous>, transform_indices = @transform_2, window_bounds = array<i64: 1, 128>}, {transform_indices = @transform_3, window_bounds = array<i64: 2, 128>}]} {
    %c0 = arith.constant 0 : index
    %c0_0 = arith.constant 0 : index
    %0 = vector.load %arg1[%c0, %c0_0] : memref<2x256xf32, #tpu.memory_space<vmem>>, vector<2x256xf32>
    %c0_1 = arith.constant 0 : index
    %c0_2 = arith.constant 0 : index
    %1 = vector.load %arg2[%c0_1, %c0_2] : memref<256x128xf32, #tpu.memory_space<vmem>>, vector<256x128xf32>
    %cst = arith.constant dense<0.000000e+00> : vector<2x128xf32>
    %2 = tpu.matmul %0, %1, %cst {dimension_numbers = #tpu.dot_dimension_numbers<[1], [0], [0], [1], [0, 0, 1, 1], [], []>} : vector<2x256xf32>, vector<256x128xf32>, vector<2x128xf32> -> vector<2x128xf32>
    %c0_3 = arith.constant 0 : index
    %c0_4 = arith.constant 0 : index
    %3 = vector.load %arg3[%c0_3, %c0_4] : memref<1x128xf32, #tpu.memory_space<vmem>>, vector<1x128xf32>
    %4 = vector.broadcast %3 : vector<1x128xf32> to vector<2x128xf32>
    %5 = arith.addf %2, %4 : vector<2x128xf32>
    %c0_5 = arith.constant 0 : index
    %c0_6 = arith.constant 0 : index
    %6 = vector.load %arg4[%c0_5, %c0_6] : memref<2x128xf32, #tpu.memory_space<vmem>>, vector<2x128xf32>
    tpu.vector_store %arg4[%c0_5, %c0_6], %5 {strides = array<i32>} : memref<2x128xf32, #tpu.memory_space<vmem>>, vector<2x128xf32>,
    return
  }
  func.func @transform_0(%arg0: i32) -> (i32, i32) {
    %c0_i32 = arith.constant 0 : i32
    %c0_i32_0 = arith.constant 0 : i32
    return %arg0, %c0_i32 : i32, i32
  }
  func.func @transform_1(%arg0: i32) -> (i32, i32) {
    %c0_i32 = arith.constant 0 : i32
    %c0_i32_0 = arith.constant 0 : i32
    %c0_i32_1 = arith.constant 0 : i32
    return %c0_i32, %c0_i32_0 : i32, i32
  }
  func.func @transform_2(%arg0: i32) -> (i32, i32) {
    %c0_i32 = arith.constant 0 : i32
    %c0_i32_0 = arith.constant 0 : i32
    %c0_i32_1 = arith.constant 0 : i32
    return %c0_i32, %c0_i32_0 : i32, i32
  }
  func.func @transform_3(%arg0: i32) -> (i32, i32) {
    %c0_i32 = arith.constant 0 : i32
    %c0_i32_0 = arith.constant 0 : i32
    return %arg0, %c0_i32 : i32, i32
  }
}

</mosaic_0001>

<bundles_post_ra>
// kernel: tpu_custom_call.1
= control target key start
LH: loop header
LB: loop body
LE: loop exit
PB: predicated region body
PF: predicated region fallthrough
CT: control target
= control target key end

     0   :  { %8 = vsyncpa [#allocation3], 0  ;;  %s268_s0 = inlined_call_operand.hbm [shape: f32[2,256], index: 0, kind: input, shape index: {}]   ;;  %s269_s1 = inlined_call_operand.hbm [shape: f32[256,128], index: 1, kind: input, shape index: {}]   ;;  %s270_s2 = inlined_call_operand.vmem [shape: f32[1,128], index: 2, kind: input, shape index: {}]   ;;  %s271_s3 = inlined_call_operand.hbm [shape: f32[2,128], index: 3, kind: output, shape index: {}]  }
   0x1   :  { %9 = vsyncpa [#allocation6], 0 }
   0x2   :  { %10 = vsyncpa [#allocation4], 0  ;;  %s16_s14 = sshll.u32 %s268_s0, 4  ;;  %s231_s15 = smov [#allocation2]   ;;  %s17_s14 = int_to_ptr.hbm [resolvable:$true] %s16_s14 }
   0x3   :  { %s18_s16 = sshll.u32 %s231_s15, 4  ;;  %s26_s19 = sshll.u32 %s269_s1, 4  ;;  %s19_s16 = int_to_ptr.vmem [resolvable:$true] %s18_s16  ;;  %s27_s19 = int_to_ptr.hbm [resolvable:$true] %s26_s19 }
   0x4   :  { %21 = dma.hbm_to_vmem [thread:$0]  %s17_s14, 64, %s19_s16, [#allocation3]  }
   0x5   :  { %s232_s20 = smov [#allocation5]   ;;  %s233_s22 = smov 128  }
   0x6   :  { %s28_s21 = sshll.u32 %s232_s20, 4  ;;  %s234_s23 = smov 8   ;;  %s29_s21 = int_to_ptr.vmem [resolvable:$true] %s28_s21 }
   0x7   :  { %34 = dma.hbm_to_vmem [thread:$0]  %s27_s19, 4096, %s29_s21, [#allocation6], %s233_s22, %s233_s22, %s234_s23  }
   0x8   :  { %225 = dma.done.wait [#allocation3], 64  }
   0x9   :  { %226 = vsyncadd [#allocation3], 4294967232 }
   0xa   :  { %227 = dma.done.wait [#allocation6], 4096  }
   0xb   :  { %228 = vsyncadd [#allocation6], 4294963200  ;;  %v61_v0 = vld [vmem:[#allocation5 + $0x78] sm:$0xff]  ;;  %v60_v1 = vld [vmem:[#allocation5 + $0x70] sm:$0xff]  ;;  %s235_s24 = smov [#allocation7]   ;;  %s136_s28 = sshll.u32 %s271_s3, 4  ;;  %s137_s28 = int_to_ptr.hbm [resolvable:$true] %s136_s28 }
   0xc   :  { %v77_v2 = vld [vmem:[#allocation5 + $0xf8] sm:$0xff]  ;;  %88 = vmatpush.msra.mxu0 %v61_v0  ;;  %v76_v3 = vld [vmem:[#allocation5 + $0xf0] sm:$0xff]  ;;  %v59_v4 = vld [vmem:[#allocation5 + $0x68] sm:$0xff]  ;;  %s134_s25 = sshll.u32 %s235_s24, 4  ;;  %s135_s25 = int_to_ptr.vmem [resolvable:$true] %s134_s25 }
   0xd   :  { %108 = vmatpush.msra.mxu1 %v77_v2  ;;  %v75_v5 = vld [vmem:[#allocation5 + $0xe8] sm:$0xff]  ;;  %v58_v6 = vld [vmem:[#allocation5 + $0x60] sm:$0xff]  ;;  %v57_v8 = vld [vmem:[#allocation5 + $0x58] sm:$0xff] }
   0xe   :  { %89 = vmatpush.msra.mxu0 %v60_v1  ;;  %v74_v7 = vld [vmem:[#allocation5 + $0xe0] sm:$0xff]  ;;  %v73_v9 = vld [vmem:[#allocation5 + $0xd8] sm:$0xff]  ;;  %v56_v10 = vld [vmem:[#allocation5 + $0x50] sm:$0xff] }
   0xf   :  { %109 = vmatpush.msra.mxu1 %v76_v3  ;;  %v72_v11 = vld [vmem:[#allocation5 + $0xd0] sm:$0xff]  ;;  %v55_v12 = vld [vmem:[#allocation5 + $0x48] sm:$0xff]  ;;  %v45_v14 = vld [vmem:[#allocation2] sm:$0xf] }
  0x10   :  { %90 = vmatpush.msra.mxu0 %v59_v4  ;;  %v71_v13 = vld [vmem:[#allocation5 + $0xc8] sm:$0xff]  ;;  %83 = vst [vmem:[#allocation1] ss:$4 sm:$0xff] %v45_v14  ;;  %v54_v15 = vld [vmem:[#allocation5 + $0x40] sm:$0xff]  ;;  %v53_v17 = vld [vmem:[#allocation5 + $0x38] sm:$0xff] }
  0x11   :  { %110 = vmatpush.msra.mxu1 %v75_v5  ;;  %v70_v16 = vld [vmem:[#allocation5 + $0xc0] sm:$0xff]  ;;  %v69_v18 = vld [vmem:[#allocation5 + $0xb8] sm:$0xff]  ;;  %v52_v19 = vld [vmem:[#allocation5 + $0x30] sm:$0xff] }
  0x12   :  { %91 = vmatpush.msra.mxu0 %v58_v6  ;;  %v68_v20 = vld [vmem:[#allocation5 + $0xb0] sm:$0xff]  ;;  %v51_v21 = vld [vmem:[#allocation5 + $0x28] sm:$0xff]  ;;  %v50_v23 = vld [vmem:[#allocation5 + $0x20] sm:$0xff] }
  0x13   :  { %111 = vmatpush.msra.mxu1 %v74_v7  ;;  %v67_v22 = vld [vmem:[#allocation5 + $0xa8] sm:$0xff]  ;;  %v66_v24 = vld [vmem:[#allocation5 + $0xa0] sm:$0xff]  ;;  %v49_v25 = vld [vmem:[#allocation5 + $0x18] sm:$0xff] }
  0x14   :  { %92 = vmatpush.msra.mxu0 %v57_v8  ;;  %v65_v26 = vld [vmem:[#allocation5 + $0x98] sm:$0xff]  ;;  %v48_v27 = vld [vmem:[#allocation5 + $0x10] sm:$0xff]  ;;  %v47_v29 = vld [vmem:[#allocation5 + $0x8] sm:$0xff] }
  0x15   :  { %112 = vmatpush.msra.mxu1 %v73_v9  ;;  %v64_v28 = vld [vmem:[#allocation5 + $0x90] sm:$0xff]  ;;  %v63_v30 = vld [vmem:[#allocation5 + $0x88] sm:$0xff]  ;;  %v46_v31 = vld [vmem:[#allocation5] sm:$0xff] }
  0x16   :  { %93 = vmatpush.msra.mxu0 %v56_v10  ;;  %v62_v32 = vld [vmem:[#allocation5 + $0x80] sm:$0xff]  ;;  %v152_v35 = vld [vmem:[%s270_s2] ss:$0 sm:$0xff] }
  0x17   :  { %113 = vmatpush.msra.mxu1 %v72_v11  ;;  %v84_v33 = vld.sshfl [vmem:[#allocation1] sm:$0xff pattern:$0x73625140]  ;;  %v85_v34 = vld.sshfl [vmem:[#allocation1 + $0x8] sm:$0xff pattern:$0x73625140] }
  0x18   :  { %94 = vmatpush.msra.mxu0 %v55_v12 }
  0x19   :  { %114 = vmatpush.msra.mxu1 %v71_v13 }
  0x1a   :  { %95 = vmatpush.msra.mxu0 %v54_v15 }
  0x1b   :  { %115 = vmatpush.msra.mxu1 %v70_v16 }
  0x1c   :  { %96 = vmatpush.msra.mxu0 %v53_v17 }
  0x1d   :  { %116 = vmatpush.msra.mxu1 %v69_v18 }
  0x1e   :  { %97 = vmatpush.msra.mxu0 %v52_v19 }
  0x1f   :  { %117 = vmatpush.msra.mxu1 %v68_v20 }
  0x20   :  { %98 = vmatpush.msra.mxu0 %v51_v21 }
  0x21   :  { %118 = vmatpush.msra.mxu1 %v67_v22 }
  0x22   :  { %99 = vmatpush.msra.mxu0 %v50_v23 }
  0x23   :  { %119 = vmatpush.msra.mxu1 %v66_v24 }
  0x24   :  { %100 = vmatpush.msra.mxu0 %v49_v25 }
  0x25   :  { %120 = vmatpush.msra.mxu1 %v65_v26 }
  0x26   :  { %101 = vmatpush.msra.mxu0 %v48_v27 }
  0x27   :  { %121 = vmatpush.msra.mxu1 %v64_v28 }
  0x28   :  { %102 = vmatpush.msra.mxu0 %v47_v29 }
  0x29   :  { %122 = vmatpush.msra.mxu1 %v63_v30 }
  0x2a   :  { %103 = vmatpush.msra.mxu0 %v46_v31 }
  0x2b   :  { %123 = vmatpush.msra.mxu1 %v62_v32  ;;  %104 = vmatmul.f32.vlgmr.msra.gmra.mxu0 %v84_v33 }
  0x2c   :  { %124 = vmatmul.f32.vlgmr.msra.gmra.mxu1 %v85_v34 }
  0xa8   :  { %v105_v36 = vpop.f32.mrf.mxu0 }
  0xa9   :  { %v125_v37 = vpop.f32.mrf.mxu1  ;;  %v106_v38 = vadd.f32 %v152_v35, %v105_v36 }
  0xab   :  { %v126_v39 = vadd.f32 %v125_v37, %v106_v38 }
  0xad   :  { %128 = vst [vmem:[#allocation7] sm:$0x3] %v126_v39 }
  0xae   :  { %139 = dma.vmem_to_hbm [thread:$0]  %s135_s25, 32, %s137_s28, [#allocation4]  }
  0xaf   :  { %229 = dma.done.wait [#allocation4], 32  }
  0xb0   :  { %230 = vsyncadd [#allocation4], 4294967264 }
  0xb1   :  { %144 = vsyncpa [#allocation3], 1 }
  0xb2   :  { %145 = vsyncpa [#allocation6], 1 }
  0xb3   :  { %146 = vsyncpa [#allocation4], 1 }

</bundles_post_ra>
